<compile_context>
chip_gen: v7x
topology: tpu7x:2x2x1
jax: 0.10.0
libtpu: 0.0.40
codegen_flags: <defaults>
</compile_context>

<pallas_src>
import numpy as np
import jax
import jax.numpy as jnp
from jax.experimental import pallas as pl
from jax.experimental.pallas import tpu as pltpu


def _round_up(x, m):
    return ((x + m - 1) // m) * m


# ----------------------------------------------------------------------------
# Deterministic parameter construction (librosa.filters.mel reimplemented,
# slaney mel scale + slaney norm, librosa defaults).
# ----------------------------------------------------------------------------
def _hz_to_mel(f):
    f = np.asarray(f, dtype=np.float64)
    f_sp = 200.0 / 3.0
    mels = f / f_sp
    min_log_hz = 1000.0
    min_log_mel = min_log_hz / f_sp
    logstep = np.log(6.4) / 27.0
    log_t = f >= min_log_hz
    safe_f = np.maximum(f, 1e-10)
    return np.where(log_t, min_log_mel + np.log(safe_f / min_log_hz) / logstep, mels)


def _mel_to_hz(m):
    m = np.asarray(m, dtype=np.float64)
    f_sp = 200.0 / 3.0
    freqs = f_sp * m
    min_log_hz = 1000.0
    min_log_mel = min_log_hz / f_sp
    logstep = np.log(6.4) / 27.0
    log_t = m >= min_log_mel
    return np.where(log_t, min_log_hz * np.exp(logstep * (m - min_log_mel)), freqs)


def mel_filterbank(sr, n_fft, n_mels, fmin, fmax):
    """Return (n_mels, n_fft//2+1) slaney-normalized triangular mel filters."""
    n_freq = n_fft // 2 + 1
    fftfreqs = np.linspace(0.0, sr / 2.0, n_freq)
    mel_pts = np.linspace(_hz_to_mel(fmin), _hz_to_mel(fmax), n_mels + 2)
    mel_f = _mel_to_hz(mel_pts)
    fdiff = np.diff(mel_f)
    ramps = mel_f[:, None] - fftfreqs[None, :]
    weights = np.zeros((n_mels, n_freq), dtype=np.float64)
    for i in range(n_mels):
        lower = -ramps[i] / fdiff[i]
        upper = ramps[i + 2] / fdiff[i + 1]
        weights[i] = np.maximum(0.0, np.minimum(lower, upper))
    enorm = 2.0 / (mel_f[2: n_mels + 2] - mel_f[:n_mels])
    weights *= enorm[:, None]
    return weights.astype(np.float32)


def hann_window(win_length):
    # torch.hann_window default: periodic=True
    n = np.arange(win_length, dtype=np.float64)
    return (0.5 - 0.5 * np.cos(2.0 * np.pi * n / win_length)).astype(np.float32)


def dft_bases(n_fft):
    """Real-DFT cos/sin bases, shape (n_fft, n_fft//2 + 1)."""
    n_freq = n_fft // 2 + 1
    n = np.arange(n_fft, dtype=np.float64)[:, None]
    k = np.arange(n_freq, dtype=np.float64)[None, :]
    ang = 2.0 * np.pi * n * k / n_fft
    return np.cos(ang).astype(np.float32), np.sin(ang).astype(np.float32)


# ----------------------------------------------------------------------------
# Pallas kernel: per-row-tile hot path.
# ----------------------------------------------------------------------------
def _make_mel_kernel(n_freq_pad, eps, clip_lo, a_coef, b_coef, norm_abs):
    eps = float(eps)
    clip_lo = float(clip_lo)
    a_coef = float(a_coef)
    b_coef = float(b_coef)
    norm_abs = float(norm_abs)

    def kernel(frames_ref, basis_ref, melmat_ref, out_ref):
        # frames: (tm, n_fft) bf16, basis: (n_fft, 2*Fp) bf16 (window folded in).
        # One wide MXU matmul with f32 accumulation gives [re | im].
        ri = jnp.dot(frames_ref[...], basis_ref[...],
                     preferred_element_type=jnp.float32)        # (tm, 2*Fp)
        re = ri[:, :n_freq_pad]                                  # 128-aligned slices
        im = ri[:, n_freq_pad:]
        amp = jnp.sqrt(jnp.maximum(re * re + im * im, eps))      # (tm, Fp) f32
        # mel projection kept in f32 (padded freq rows / mel cols are zero).
        mel = jnp.dot(amp, melmat_ref[...],
                      preferred_element_type=jnp.float32)        # (tm, mel_pad)
        m = jnp.maximum(mel, clip_lo)
        # fused dB + symmetric normalize:  clip(a*ln(m) + b, +-norm_abs)
        out_ref[...] = jnp.clip(a_coef * jnp.log(m) + b_coef, -norm_abs, norm_abs)

    return kernel


def mel_spectrogram(
    x,
    *,
    fs=22050,
    fft_size=1024,
    hop_size=256,
    win_length=None,
    num_mels=80,
    fmin=80.0,
    fmax=7600.0,
    eps=1e-10,
    tile_m=256,           # rows per grid step; tune 128-512 per TPU generation
):
    """JAX/Pallas equivalent of MelSpectrogram.forward.

    Args:
      x: waveform, (B, T) or (B, 1, T), float32.
    Returns:
      (B, num_mels, n_frames) float32.
    """
    if win_length is None:
        win_length = fft_size
    assert win_length == fft_size, "win_length != fft_size not needed here"
    assert fft_size % 128 == 0, "fft_size must be a multiple of 128"

    if x.ndim == 3:
        x = x.reshape(-1, x.shape[-1])
    x = x.astype(jnp.float32)
    B, T = x.shape

    # --- framing (center=True, pad_mode='constant'), XLA prologue ---
    # TODO(synk): frame inside the kernel (waveform in pl.ANY + manual
    #             hop-strided DMA) to avoid materializing the ~(fft/hop)x
    #             blown-up frame array in HBM before the pallas_call.
    pad = fft_size // 2
    x_pad = jnp.pad(x, ((0, 0), (pad, pad)))
    n_frames = 1 + T // hop_size
    frame_idx = (
        np.arange(n_frames)[:, None] * hop_size + np.arange(fft_size)[None, :]
    )  # static (n_frames, n_fft)
    frames = x_pad[:, frame_idx].reshape(B * n_frames, fft_size)
    M = B * n_frames

    # Row tile: as large as possible, clamped to the (16-rounded) problem size
    # so small problems don't over-pad.  Multiple of 16 for bf16 packing.
    tile_m = max(16, min(int(tile_m) // 16 * 16, _round_up(M, 16)))
    M_pad = _round_up(M, tile_m)
    if M_pad != M:
        frames = jnp.pad(frames, ((0, M_pad - M), (0, 0)))
    frames = frames.astype(jnp.bfloat16)        # bf16 MXU operands, f32 accumulate

    # --- constants: window folded into padded, concatenated DFT bases ---
    n_freq = fft_size // 2 + 1
    n_freq_pad = _round_up(n_freq, 128)          # lane-aligned freq dim
    mel_pad = _round_up(num_mels, 128)           # lane-dense output

    win = hann_window(win_length)[:, None]                        # (n_fft, 1)
    cos_b, sin_b = dft_bases(fft_size)                            # (n_fft, n_freq)
    basis_np = np.zeros((fft_size, 2 * n_freq_pad), dtype=np.float32)
    basis_np[:, :n_freq] = win * cos_b
    basis_np[:, n_freq_pad:n_freq_pad + n_freq] = win * sin_b
    basis = jnp.asarray(basis_np, dtype=jnp.bfloat16)             # (n_fft, 2*Fp)

    melmat_np = np.zeros((n_freq_pad, mel_pad), dtype=np.float32)
    melmat_np[:n_freq, :num_mels] = mel_filterbank(fs, fft_size, num_mels, fmin, fmax).T
    melmat = jnp.asarray(melmat_np)                               # f32 (accuracy)

    # Fused epilogue: spectral_normalize_torch(symmetric=True) as one affine.
    min_level_db, ref_level_db, norm_abs, clip_val = -100.0, 20.0, 4.0, 1e-5
    s = 2.0 * norm_abs / (-min_level_db)
    a_coef = s * 20.0 / np.log(10.0)
    b_coef = -s * (ref_level_db + min_level_db) - norm_abs
    clip_lo = max(float(eps), clip_val)          # clamp(clamp(x,eps),clip_val)

    kernel = _make_mel_kernel(n_freq_pad, eps, clip_lo, a_coef, b_coef, norm_abs)

    grid = (M_pad // tile_m,)
    out = pl.pallas_call(
        kernel,
        out_shape=jax.ShapeDtypeStruct((M_pad, mel_pad), jnp.float32),
        grid_spec=pltpu.PrefetchScalarGridSpec(
            num_scalar_prefetch=0,
            grid=grid,
            in_specs=[
                pl.BlockSpec((tile_m, fft_size), lambda i: (i, 0)),        # frames
                pl.BlockSpec((fft_size, 2 * n_freq_pad), lambda i: (0, 0)),  # [cos|sin]*win
                pl.BlockSpec((n_freq_pad, mel_pad), lambda i: (0, 0)),     # mel filterbank
            ],
            out_specs=pl.BlockSpec((tile_m, mel_pad), lambda i: (i, 0)),
        ),
        compiler_params=pltpu.CompilerParams(
            dimension_semantics=("parallel",),
        ),
    )(frames, basis, melmat)

    out = out[:M, :num_mels].reshape(B, n_frames, num_mels)
    return jnp.transpose(out, (0, 2, 1))          # (B, num_mels, n_frames)


# ----------------------------------------------------------------------------
# Pure-JAX reference (same math, no Pallas).  dft_dtype lets us build both a
# matched-precision (bf16 DFT operands) and a full-f32 reference.
# ----------------------------------------------------------------------------
def mel_spectrogram_ref(x, *, fs, fft_size, hop_size, num_mels, fmin, fmax,
                        eps=1e-10, dft_dtype=jnp.float32):
    if x.ndim == 3:
        x = x.reshape(-1, x.shape[-1])
    x = x.astype(jnp.float32)
    B, T = x.shape
    pad = fft_size // 2
    x_pad = jnp.pad(x, ((0, 0), (pad, pad)))
    n_frames = 1 + T // hop_size
    idx = np.arange(n_frames)[:, None] * hop_size + np.arange(fft_size)[None, :]
    frames = x_pad[:, idx]                                  # (B, F, n_fft)

    win = hann_window(fft_size)[:, None]
    cos_b, sin_b = dft_bases(fft_size)
    cos_w = jnp.asarray(win * cos_b, dtype=dft_dtype)
    sin_w = jnp.asarray(win * sin_b, dtype=dft_dtype)
    fr = frames.astype(dft_dtype)
    prec = "highest" if dft_dtype == jnp.float32 else None
    re = jnp.einsum("bfn,nk->bfk", fr, cos_w, precision=prec,
                    preferred_element_type=jnp.float32)
    im = jnp.einsum("bfn,nk->bfk", fr, sin_w, precision=prec,
                    preferred_element_type=jnp.float32)
    amp = jnp.sqrt(jnp.maximum(re * re + im * im, eps))
    melmat = jnp.asarray(mel_filterbank(fs, fft_size, num_mels, fmin, fmax).T)
    mel = jnp.maximum(
        jnp.einsum("bfk,km->bfm", amp, melmat, precision="highest"), eps)
    db = 20.0 * jnp.log10(jnp.maximum(mel, 1e-5)) - 20.0
    out = jnp.clip(8.0 * ((db + 100.0) / 100.0) - 4.0, -4.0, 4.0)
    return jnp.transpose(out, (0, 2, 1))


if __name__ == "__main__":
    # Small, module-consistent configuration.
    fs = 22050
    fft_size = 256
    hop_size = 64
    num_mels = 32
    fmin, fmax = 80.0, 7600.0

    B, T = 2, 2048
    key = jax.random.PRNGKey(0)
    x = jax.random.normal(key, (B, 1, T), dtype=jnp.float32)  # (B, 1, T) waveform

    out = mel_spectrogram(
        x, fs=fs, fft_size=fft_size, hop_size=hop_size,
        num_mels=num_mels, fmin=fmin, fmax=fmax,
    )
    out = jax.block_until_ready(out)

    n_frames = 1 + T // hop_size
    assert out.shape == (B, num_mels, n_frames), out.shape
    assert bool(jnp.all(jnp.isfinite(out)))

    # Matched-precision reference (bf16 DFT operands, f32 accumulation):
    # validates the Pallas tiling / padding / fused epilogue tightly.
    ref_bf16 = jax.block_until_ready(mel_spectrogram_ref(
        x, fs=fs, fft_size=fft_size, hop_size=hop_size, num_mels=num_mels,
        fmin=fmin, fmax=fmax, dft_dtype=jnp.bfloat16))
    assert float(jnp.max(jnp.abs(out - ref_bf16))) < 1e-2

    # Full-f32 reference: sanity-check bf16 MXU accuracy on average.
    ref_f32 = jax.block_until_ready(mel_spectrogram_ref(
        x, fs=fs, fft_size=fft_size, hop_size=hop_size, num_mels=num_mels,
        fmin=fmin, fmax=fmax, dft_dtype=jnp.float32))
    assert float(jnp.mean(jnp.abs(out - ref_f32))) < 1e-2

    print("KERNEL_OK")
</pallas_src>

<mosaic_0001>
module attributes {stable_mosaic.version = 11 : i64} {
  func.func @kernel(%arg0: i32, %arg1: memref<80x256xbf16, #tpu.memory_space<vmem>>, %arg2: memref<256x512xbf16, #tpu.memory_space<vmem>>, %arg3: memref<256x128xf32, #tpu.memory_space<vmem>>, %arg4: memref<80x128xf32, #tpu.memory_space<vmem>>) attributes {dimension_semantics = [#tpu.dimension_semantics<parallel>], iteration_bounds = array<i64: 1>, scalar_prefetch = 0 : i64, scratch_operands = 0 : i64, tpu.core_type = #tpu.core_type<tc>, window_params = [{transform_indices = @transform_0, window_bounds = array<i64: 80, 256>}, {pipeline_mode = #tpu.pipeline_mode<synchronous>, transform_indices = @transform_1, window_bounds = array<i64: 256, 512>}, {pipeline_mode = #tpu.pipeline_mode<synchronous>, transform_indices = @transform_2, window_bounds = array<i64: 256, 128>}, {transform_indices = @transform_3, window_bounds = array<i64: 80, 128>}]} {
    %c0 = arith.constant 0 : index
    %c0_0 = arith.constant 0 : index
    %0 = vector.load %arg1[%c0, %c0_0] : memref<80x256xbf16, #tpu.memory_space<vmem>>, vector<80x256xbf16>
    %c0_1 = arith.constant 0 : index
    %c0_2 = arith.constant 0 : index
    %1 = vector.load %arg2[%c0_1, %c0_2] : memref<256x512xbf16, #tpu.memory_space<vmem>>, vector<256x512xbf16>
    %cst = arith.constant dense<0.000000e+00> : vector<80x512xf32>
    %2 = tpu.matmul %0, %1, %cst {dimension_numbers = #tpu.dot_dimension_numbers<[1], [0], [0], [1], [0, 0, 1, 1], [], []>} : vector<80x256xbf16>, vector<256x512xbf16>, vector<80x512xf32> -> vector<80x512xf32>
    %3 = vector.extract_strided_slice %2 {offsets = [0, 0], sizes = [80, 256], strides = [1, 1]} : vector<80x512xf32> to vector<80x256xf32>
    %4 = vector.extract_strided_slice %2 {offsets = [0, 256], sizes = [80, 256], strides = [1, 1]} : vector<80x512xf32> to vector<80x256xf32>
    %5 = arith.mulf %3, %3 : vector<80x256xf32>
    %6 = arith.mulf %4, %4 : vector<80x256xf32>
    %7 = arith.addf %5, %6 : vector<80x256xf32>
    %cst_3 = arith.constant 1.000000e-10 : f32
    %8 = vector.broadcast %cst_3 : f32 to vector<80x256xf32>
    %9 = arith.maximumf %7, %8 : vector<80x256xf32>
    %10 = math.sqrt %9 : vector<80x256xf32>
    %c0_4 = arith.constant 0 : index
    %c0_5 = arith.constant 0 : index
    %11 = vector.load %arg3[%c0_4, %c0_5] : memref<256x128xf32, #tpu.memory_space<vmem>>, vector<256x128xf32>
    %cst_6 = arith.constant dense<0.000000e+00> : vector<80x128xf32>
    %12 = tpu.matmul %10, %11, %cst_6 {dimension_numbers = #tpu.dot_dimension_numbers<[1], [0], [0], [1], [0, 0, 1, 1], [], []>} : vector<80x256xf32>, vector<256x128xf32>, vector<80x128xf32> -> vector<80x128xf32>
    %cst_7 = arith.constant 9.99999974E-6 : f32
    %13 = vector.broadcast %cst_7 : f32 to vector<80x128xf32>
    %14 = arith.maximumf %12, %13 : vector<80x128xf32>
    %15 = math.log %14 : vector<80x128xf32>
    %cst_8 = arith.constant 0.694871187 : f32
    %16 = vector.broadcast %cst_8 : f32 to vector<80x128xf32>
    %17 = arith.mulf %16, %15 : vector<80x128xf32>
    %cst_9 = arith.constant 2.400000e+00 : f32
    %18 = vector.broadcast %cst_9 : f32 to vector<80x128xf32>
    %19 = arith.addf %17, %18 : vector<80x128xf32>
    %cst_10 = arith.constant -4.000000e+00 : f32
    %cst_11 = arith.constant 4.000000e+00 : f32
    %20 = vector.broadcast %cst_10 : f32 to vector<80x128xf32>
    %21 = arith.maximumf %20, %19 : vector<80x128xf32>
    %22 = vector.broadcast %cst_11 : f32 to vector<80x128xf32>
    %23 = arith.minimumf %22, %21 : vector<80x128xf32>
    %c0_12 = arith.constant 0 : index
    %c0_13 = arith.constant 0 : index
    %24 = vector.load %arg4[%c0_12, %c0_13] : memref<80x128xf32, #tpu.memory_space<vmem>>, vector<80x128xf32>
    tpu.vector_store %arg4[%c0_12, %c0_13], %23 {strides = array<i32>} : memref<80x128xf32, #tpu.memory_space<vmem>>, vector<80x128xf32>,
    return
  }
  func.func @transform_0(%arg0: i32) -> (i32, i32) {
    %c0_i32 = arith.constant 0 : i32
    %c0_i32_0 = arith.constant 0 : i32
    return %arg0, %c0_i32 : i32, i32
  }
  func.func @transform_1(%arg0: i32) -> (i32, i32) {
    %c0_i32 = arith.constant 0 : i32
    %c0_i32_0 = arith.constant 0 : i32
    %c0_i32_1 = arith.constant 0 : i32
    return %c0_i32, %c0_i32_0 : i32, i32
  }
  func.func @transform_2(%arg0: i32) -> (i32, i32) {
    %c0_i32 = arith.constant 0 : i32
    %c0_i32_0 = arith.constant 0 : i32
    %c0_i32_1 = arith.constant 0 : i32
    return %c0_i32, %c0_i32_0 : i32, i32
  }
  func.func @transform_3(%arg0: i32) -> (i32, i32) {
    %c0_i32 = arith.constant 0 : i32
    %c0_i32_0 = arith.constant 0 : i32
    return %arg0, %c0_i32 : i32, i32
  }
}

</mosaic_0001>

<bundles_post_ra>
// kernel: tpu_custom_call.1
= control target key start
LH: loop header
LB: loop body
LE: loop exit
PB: predicated region body
PF: predicated region fallthrough
CT: control target
= control target key end

     0   :  { %8 = vsyncpa [#allocation3], 0  ;;  %s1874_s0 = inlined_call_operand.hbm [shape: bf16[80,256], index: 0, kind: input, shape index: {}]   ;;  %s1875_s1 = inlined_call_operand.hbm [shape: bf16[256,512], index: 1, kind: input, shape index: {}]   ;;  %s1876_s2 = inlined_call_operand.hbm [shape: f32[256,128], index: 2, kind: input, shape index: {}]   ;;  %s1877_s3 = inlined_call_operand.hbm [shape: f32[80,128], index: 3, kind: output, shape index: {}]  }
   0x1   :  { %9 = vsyncpa [#allocation6], 0 }
   0x2   :  { %10 = vsyncpa [#allocation4], 0  ;;  %s1598_s12 = smov [#allocation5]   ;;  %s1504_s16 = scalar_lea.hbm %s1875_s1, 8192 }
   0x3   :  { %s28_s13 = sshll.u32 %s1598_s12, 4  ;;  %p1505_p0 = scmp.ne.s32.totalorder %s1875_s1, %s1504_s16  ;;  %s29_s13 = int_to_ptr.vmem [resolvable:$true] %s28_s13 }
   0x4   :  { %p1508_p1 = scmp.lt.u32.totalorder %s1504_s16, %s1875_s1 }
   0x6   :  { %p1510_p2 = pnand %p1508_p1, %p1505_p0 }
   0x8   :  { %1513 = shalt.err (!%p1510_p2)
}
   0x9   :  { %s1514_s21 = scalar_lea.vmem %s29_s13, 8192  ;;  %p1519_p4 = scmp.lt.s32.totalorder %s29_s13, %s29_s13 }
   0xa   :  { %p1515_p3 = scmp.ne.s32.totalorder %s29_s13, %s1514_s21  ;;  %p1520_p5 = scmp.lt.s32.totalorder %s1514_s21, %s1514_s21 }
   0xc   :  { %p1521_p6 = por %p1520_p5, %p1519_p4 }
   0xe   :  { %p1522_p7 = pnand %p1521_p6, %p1515_p3 }
  0x10   :  { %1525 = shalt.err (!%p1522_p7)
}
  0x11   :  { %s1599_s22 = smov 256   ;;  %s1600_s23 = smov 16  }
  0x12   :  { %34 = dma.hbm_to_vmem [thread:$0]  %s1875_s1, 8192, %s29_s13, [#allocation6], %s1599_s22, %s1599_s22, %s1600_s23  }
  0x13   :  { %s1601_s26 = smov [#allocation2]   ;;  %s1526_s30 = scalar_lea.hbm %s1874_s0, 1280 }
  0x14   :  { %s16_s27 = sshll.u32 %s1601_s26, 4  ;;  %p1527_p8 = scmp.ne.s32.totalorder %s1874_s0, %s1526_s30  ;;  %s17_s27 = int_to_ptr.vmem [resolvable:$true] %s16_s27 }
  0x15   :  { %p1530_p9 = scmp.lt.u32.totalorder %s1526_s30, %s1874_s0 }
  0x17   :  { %p1532_p10 = pnand %p1530_p9, %p1527_p8 }
  0x19   :  { %1535 = shalt.err (!%p1532_p10)
}
  0x1a   :  { %s1536_s8 = scalar_lea.vmem %s17_s27, 1280  ;;  %p1541_p12 = scmp.lt.s32.totalorder %s17_s27, %s17_s27 }
  0x1b   :  { %p1537_p11 = scmp.ne.s32.totalorder %s17_s27, %s1536_s8  ;;  %p1542_p13 = scmp.lt.s32.totalorder %s1536_s8, %s1536_s8 }
  0x1d   :  { %p1543_p0 = por %p1542_p13, %p1541_p12 }
  0x1f   :  { %p1544_p1 = pnand %p1543_p0, %p1537_p11 }
  0x21   :  { %1547 = shalt.err (!%p1544_p1)
}
  0x22   :  { %s1602_s1 = smov 128   ;;  %s1603_s9 = smov 8  }
  0x23   :  { %22 = dma.hbm_to_vmem [thread:$0]  %s1874_s0, 1280, %s17_s27, [#allocation3], %s1602_s1, %s1602_s1, %s1603_s9  }
  0x24   :  { %s1604_s12 = smov [#allocation7]   ;;  %s1548_s16 = scalar_lea.hbm %s1876_s2, 4096 }
  0x25   :  { %s40_s13 = sshll.u32 %s1604_s12, 4  ;;  %p1549_p2 = scmp.ne.s32.totalorder %s1876_s2, %s1548_s16  ;;  %s41_s13 = int_to_ptr.vmem [resolvable:$true] %s40_s13 }
  0x26   :  { %p1552_p3 = scmp.lt.u32.totalorder %s1548_s16, %s1876_s2 }
  0x28   :  { %p1554_p4 = pnand %p1552_p3, %p1549_p2 }
  0x2a   :  { %1557 = shalt.err (!%p1554_p4)
}
  0x2b   :  { %s1558_s21 = scalar_lea.vmem %s41_s13, 4096  ;;  %p1563_p6 = scmp.lt.s32.totalorder %s41_s13, %s41_s13 }
  0x2c   :  { %p1559_p5 = scmp.ne.s32.totalorder %s41_s13, %s1558_s21  ;;  %p1564_p7 = scmp.lt.s32.totalorder %s1558_s21, %s1558_s21 }
  0x2e   :  { %p1565_p8 = por %p1564_p7, %p1563_p6 }
  0x30   :  { %p1566_p9 = pnand %p1565_p8, %p1559_p5 }
  0x32   :  { %1569 = shalt.err (!%p1566_p9)
}
  0x33   :  { %46 = dma.hbm_to_vmem [thread:$0]  %s1876_s2, 4096, %s41_s13, [#allocation6], %s1602_s1, %s1602_s1, %s1603_s9  }
  0x34   :  { %1592 = dma.done.wait [#allocation3], 1280  }
  0x35   :  { %1593 = vsyncadd [#allocation3], 4294966016 }
  0x36   :  { %1594 = dma.done.wait [#allocation6], 12288  }
  0x37   :  { %1595 = vsyncadd [#allocation6], 4294955008  ;;  %v1333_v0 = vld [vmem:[#allocation5 + $0x4] ss:$16 sps:$4 sm:$0xff]   ;;  %v1335_v1 = vld [vmem:[#allocation5 + $0xc] ss:$16 sps:$4 sm:$0xff]  }
  0x38   :  { %500 = vmatprep.subr.bf16.mxu0 %v1333_v0  ;;  %v1337_v2 = vld [vmem:[#allocation5] ss:$16 sps:$4 sm:$0xff]   ;;  %v1338_v3 = vld [vmem:[#allocation5 + $0x8] ss:$16 sps:$4 sm:$0xff]   ;;  %583 = vmatprep.subr.bf16.mxu1 %v1335_v1  ;;  %v1339_v4 = vld [vmem:[#allocation5 + $0x24] ss:$16 sps:$4 sm:$0xff]  }
  0x39   :  { %501 = vmatpush1.bf16.msra.mxu0 %v1337_v2  ;;  %584 = vmatpush1.bf16.msra.mxu1 %v1338_v3  ;;  %v1341_v5 = vld [vmem:[#allocation5 + $0x2c] ss:$16 sps:$4 sm:$0xff]   ;;  %v1343_v6 = vld [vmem:[#allocation5 + $0x20] ss:$16 sps:$4 sm:$0xff]   ;;  %v1344_v7 = vld [vmem:[#allocation5 + $0x28] ss:$16 sps:$4 sm:$0xff]  }
  0x3a   :  { %502 = vmatprep.subr.bf16.mxu0 %v1339_v4  ;;  %585 = vmatprep.subr.bf16.mxu1 %v1341_v5  ;;  %v1345_v8 = vld [vmem:[#allocation5 + $0x44] ss:$16 sps:$4 sm:$0xff]   ;;  %v1347_v9 = vld [vmem:[#allocation5 + $0x4c] ss:$16 sps:$4 sm:$0xff]   ;;  %v1349_v10 = vld [vmem:[#allocation5 + $0x40] ss:$16 sps:$4 sm:$0xff]  }
  0x3b   :  { %v1350_v11 = vld [vmem:[#allocation5 + $0x48] ss:$16 sps:$4 sm:$0xff]   ;;  %v1351_v12 = vld [vmem:[#allocation5 + $0x64] ss:$16 sps:$4 sm:$0xff]   ;;  %v1353_v13 = vld [vmem:[#allocation5 + $0x6c] ss:$16 sps:$4 sm:$0xff]  }
  0x3c   :  { %v1355_v14 = vld [vmem:[#allocation5 + $0x60] ss:$16 sps:$4 sm:$0xff]   ;;  %v1356_v15 = vld [vmem:[#allocation5 + $0x68] ss:$16 sps:$4 sm:$0xff]   ;;  %v1357_v16 = vld [vmem:[#allocation5 + $0x84] ss:$16 sps:$4 sm:$0xff]  }
  0x3d   :  { %503 = vmatpush1.bf16.msra.mxu0 %v1343_v6  ;;  %586 = vmatpush1.bf16.msra.mxu1 %v1344_v7  ;;  %v1359_v17 = vld [vmem:[#allocation5 + $0x8c] ss:$16 sps:$4 sm:$0xff]   ;;  %v1361_v18 = vld [vmem:[#allocation5 + $0x80] ss:$16 sps:$4 sm:$0xff]   ;;  %v1362_v19 = vld [vmem:[#allocation5 + $0x88] ss:$16 sps:$4 sm:$0xff]  }
  0x3e   :  { %504 = vmatprep.subr.bf16.mxu0 %v1345_v8  ;;  %587 = vmatprep.subr.bf16.mxu1 %v1347_v9  ;;  %v1363_v20 = vld [vmem:[#allocation5 + $0xa4] ss:$16 sps:$4 sm:$0xff]   ;;  %v1365_v21 = vld [vmem:[#allocation5 + $0xac] ss:$16 sps:$4 sm:$0xff]   ;;  %v1367_v22 = vld [vmem:[#allocation5 + $0xa0] ss:$16 sps:$4 sm:$0xff]  }
  0x3f   :  { %v1368_v23 = vld [vmem:[#allocation5 + $0xa8] ss:$16 sps:$4 sm:$0xff]   ;;  %v1369_v24 = vld [vmem:[#allocation5 + $0xc4] ss:$16 sps:$4 sm:$0xff]   ;;  %v1371_v25 = vld [vmem:[#allocation5 + $0xcc] ss:$16 sps:$4 sm:$0xff]  }
  0x40   :  { %v1373_v26 = vld [vmem:[#allocation5 + $0xc0] ss:$16 sps:$4 sm:$0xff]   ;;  %v1374_v27 = vld [vmem:[#allocation5 + $0xc8] ss:$16 sps:$4 sm:$0xff]   ;;  %v1375_v28 = vld [vmem:[#allocation5 + $0xe4] ss:$16 sps:$4 sm:$0xff]  }
  0x41   :  { %505 = vmatpush1.bf16.msra.mxu0 %v1349_v10  ;;  %588 = vmatpush1.bf16.msra.mxu1 %v1350_v11  ;;  %v1377_v29 = vld [vmem:[#allocation5 + $0xec] ss:$16 sps:$4 sm:$0xff]   ;;  %v1379_v30 = vld [vmem:[#allocation5 + $0xe0] ss:$16 sps:$4 sm:$0xff]   ;;  %v1380_v31 = vld [vmem:[#allocation5 + $0xe8] ss:$16 sps:$4 sm:$0xff]  }
  0x42   :  { %506 = vmatprep.subr.bf16.mxu0 %v1351_v12  ;;  %589 = vmatprep.subr.bf16.mxu1 %v1353_v13  ;;  %v1381_v32 = vld [vmem:[#allocation5 + $0x104] ss:$16 sps:$4 sm:$0xff]   ;;  %v1383_v33 = vld [vmem:[#allocation5 + $0x10c] ss:$16 sps:$4 sm:$0xff]   ;;  %v1385_v34 = vld [vmem:[#allocation5 + $0x100] ss:$16 sps:$4 sm:$0xff]  }
  0x43   :  { %v1386_v35 = vld [vmem:[#allocation5 + $0x108] ss:$16 sps:$4 sm:$0xff]   ;;  %v1387_v36 = vld [vmem:[#allocation5 + $0x124] ss:$16 sps:$4 sm:$0xff]   ;;  %v1389_v37 = vld [vmem:[#allocation5 + $0x12c] ss:$16 sps:$4 sm:$0xff]  }
  0x44   :  { %v1391_v38 = vld [vmem:[#allocation5 + $0x120] ss:$16 sps:$4 sm:$0xff]   ;;  %v1392_v39 = vld [vmem:[#allocation5 + $0x128] ss:$16 sps:$4 sm:$0xff]   ;;  %v1393_v40 = vld [vmem:[#allocation5 + $0x144] ss:$16 sps:$4 sm:$0xff]  }
  0x45   :  { %507 = vmatpush1.bf16.msra.mxu0 %v1355_v14  ;;  %590 = vmatpush1.bf16.msra.mxu1 %v1356_v15  ;;  %v1395_v41 = vld [vmem:[#allocation5 + $0x14c] ss:$16 sps:$4 sm:$0xff]   ;;  %v1397_v42 = vld [vmem:[#allocation5 + $0x140] ss:$16 sps:$4 sm:$0xff]   ;;  %v1398_v43 = vld [vmem:[#allocation5 + $0x148] ss:$16 sps:$4 sm:$0xff]  }
  0x46   :  { %508 = vmatprep.subr.bf16.mxu0 %v1357_v16  ;;  %591 = vmatprep.subr.bf16.mxu1 %v1359_v17  ;;  %v1399_v44 = vld [vmem:[#allocation5 + $0x164] ss:$16 sps:$4 sm:$0xff]   ;;  %v1401_v45 = vld [vmem:[#allocation5 + $0x16c] ss:$16 sps:$4 sm:$0xff]   ;;  %v1403_v46 = vld [vmem:[#allocation5 + $0x160] ss:$16 sps:$4 sm:$0xff]  }
  0x47   :  { %v1404_v47 = vld [vmem:[#allocation5 + $0x168] ss:$16 sps:$4 sm:$0xff]   ;;  %v1431_v48 = vld [vmem:[#allocation2 + $0x4] ss:$8 sps:$4 sm:$0xff]   ;;  %v1409_v51 = vld [vmem:[#allocation5 + $0x180] ss:$16 sps:$4 sm:$0xff]  }
  0x48   :  { %v1405_v49 = vld [vmem:[#allocation5 + $0x184] ss:$16 sps:$4 sm:$0xff]   ;;  %v1407_v50 = vld [vmem:[#allocation5 + $0x18c] ss:$16 sps:$4 sm:$0xff]   ;;  %532 = vmatprep.mubr.bf16.mxu0 %v1431_v48  ;;  %615 = vmatprep.mubr.bf16.mxu1 %v1431_v48  ;;  %v1410_v52 = vld [vmem:[#allocation5 + $0x188] ss:$16 sps:$4 sm:$0xff]  }
  0x49   :  { %509 = vmatpush1.bf16.msra.mxu0 %v1361_v18  ;;  %592 = vmatpush1.bf16.msra.mxu1 %v1362_v19  ;;  %v1411_v53 = vld [vmem:[#allocation5 + $0x1a4] ss:$16 sps:$4 sm:$0xff]   ;;  %v1413_v54 = vld [vmem:[#allocation5 + $0x1ac] ss:$16 sps:$4 sm:$0xff]   ;;  %v1415_v55 = vld [vmem:[#allocation5 + $0x1a0] ss:$16 sps:$4 sm:$0xff]  }
  0x4a   :  { %510 = vmatprep.subr.bf16.mxu0 %v1363_v20  ;;  %593 = vmatprep.subr.bf16.mxu1 %v1365_v21  ;;  %v1416_v56 = vld [vmem:[#allocation5 + $0x1a8] ss:$16 sps:$4 sm:$0xff]   ;;  %v1417_v57 = vld [vmem:[#allocation5 + $0x1c4] ss:$16 sps:$4 sm:$0xff]   ;;  %v1419_v58 = vld [vmem:[#allocation5 + $0x1cc] ss:$16 sps:$4 sm:$0xff]  }
  0x4b   :  { %v1421_v59 = vld [vmem:[#allocation5 + $0x1c0] ss:$16 sps:$4 sm:$0xff]   ;;  %v1422_v60 = vld [vmem:[#allocation5 + $0x1c8] ss:$16 sps:$4 sm:$0xff]   ;;  %v1423_v61 = vld [vmem:[#allocation5 + $0x1e4] ss:$16 sps:$4 sm:$0xff]  }
  0x4c   :  { %v1425_v62 = vld [vmem:[#allocation5 + $0x1ec] ss:$16 sps:$4 sm:$0xff]   ;;  %v902_v63 = vld [vmem:[#allocation7 + $0x80] sm:$0xff]  ;;  %v1428_v2 = vld [vmem:[#allocation5 + $0x1e8] ss:$16 sps:$4 sm:$0xff]   ;;  %s1605_s2 = smov [#allocation8]  }
  0x4d   :  { %511 = vmatpush1.bf16.msra.mxu0 %v1367_v22  ;;  %594 = vmatpush1.bf16.msra.mxu1 %v1368_v23  ;;  %v903_v0 = vld [vmem:[#allocation7 + $0x88] sm:$0xff]  ;;  %v1427_v1 = vld [vmem:[#allocation5 + $0x1e0] ss:$16 sps:$4 sm:$0xff]   ;;  %v905_v8 = vld [vmem:[#allocation7 + $0x98] sm:$0xff]  ;;  %s1118_s23 = sshll.u32 %s1605_s2, 4  ;;  %s1119_s23 = int_to_ptr.vmem [resolvable:$true] %s1118_s23 }
  0x4e   :  { %512 = vmatprep.subr.bf16.mxu0 %v1369_v24  ;;  %595 = vmatprep.subr.bf16.mxu1 %v1371_v25  ;;  %v1277_v3 = vpack.c.bf16 %v903_v0, %v902_v63  ;;  %v886_v4 = vld [vmem:[#allocation7] sm:$0xff]  ;;  %v887_v5 = vld [vmem:[#allocation7 + $0x8] sm:$0xff]  ;;  %v1429_v6 = vld [vmem:[#allocation2] ss:$8 sps:$4 sm:$0xff]   ;;  %s1570_s24 = scalar_lea.vmem %s1119_s23, 1280  ;;  %p1575_p11 = scmp.lt.s32.totalorder %s1119_s23, %s1119_s23 }
  0x4f   :  { %v904_v7 = vld [vmem:[#allocation7 + $0x90] sm:$0xff]  ;;  %v1432_v9 = vld [vmem:[#allocation2 + $0x14] ss:$8 sps:$4 sm:$0xff]   ;;  %v1279_v10 = vpack.c.bf16 %v887_v5, %v886_v4  ;;  %v889_v13 = vld [vmem:[#allocation7 + $0x18] sm:$0xff]  ;;  %p1571_p10 = scmp.ne.s32.totalorder %s1119_s23, %s1570_s24  ;;  %p1576_p12 = scmp.lt.s32.totalorder %s1570_s24, %s1570_s24 }
  0x50   :  { %v1281_v11 = vpack.c.bf16 %v905_v8, %v904_v7  ;;  %v888_v12 = vld [vmem:[#allocation7 + $0x10] sm:$0xff]  ;;  %v1434_v15 = vld [vmem:[#allocation2 + $0x10] ss:$8 sps:$4 sm:$0xff]   ;;  %v1438_v18 = vld [vmem:[#allocation2 + $0x34] ss:$8 sps:$4 sm:$0xff]  }
  0x51   :  { %513 = vmatpush1.bf16.msra.mxu0 %v1373_v26  ;;  %596 = vmatpush1.bf16.msra.mxu1 %v1374_v27  ;;  %v1283_v14 = vpack.c.bf16 %v889_v13, %v888_v12  ;;  %v1435_v16 = vld [vmem:[#allocation2 + $0x24] ss:$8 sps:$4 sm:$0xff]   ;;  %v1437_v17 = vld [vmem:[#allocation2 + $0x20] ss:$8 sps:$4 sm:$0xff]   ;;  %v1440_v19 = vld [vmem:[#allocation2 + $0x30] ss:$8 sps:$4 sm:$0xff]   ;;  %p1577_p13 = por %p1576_p12, %p1575_p11 }
  0x52   :  { %514 = vmatprep.subr.bf16.mxu0 %v1375_v28  ;;  %597 = vmatprep.subr.bf16.mxu1 %v1377_v29  ;;  %v1441_v20 = vld [vmem:[#allocation2 + $0x44] ss:$8 sps:$4 sm:$0xff]   ;;  %v1443_v21 = vld [vmem:[#allocation2 + $0x40] ss:$8 sps:$4 sm:$0xff]   ;;  %v906_v22 = vld [vmem:[#allocation7 + $0xa0] sm:$0xff] }
  0x53   :  { %v907_v23 = vld [vmem:[#allocation7 + $0xa8] sm:$0xff]  ;;  %v890_v25 = vld [vmem:[#allocation7 + $0x20] sm:$0xff]  ;;  %v908_v28 = vld [vmem:[#allocation7 + $0xb0] sm:$0xff]  ;;  %p1578_p0 = pnand %p1577_p13, %p1571_p10 }
  0x54   :  { %v1285_v24 = vpack.c.bf16 %v907_v23, %v906_v22  ;;  %v891_v26 = vld [vmem:[#allocation7 + $0x28] sm:$0xff]  ;;  %v909_v29 = vld [vmem:[#allocation7 + $0xb8] sm:$0xff] }
  0x55   :  { %515 = vmatpush1.bf16.msra.mxu0 %v1379_v30  ;;  %598 = vmatpush1.bf16.msra.mxu1 %v1380_v31  ;;  %v1287_v27 = vpack.c.bf16 %v891_v26, %v890_v25  ;;  %v1289_v30 = vpack.c.bf16 %v909_v29, %v908_v28  ;;  %v892_v31 = vld [vmem:[#allocation7 + $0x30] sm:$0xff] }
  0x56   :  { %516 = vmatprep.subr.bf16.mxu0 %v1381_v32  ;;  %599 = vmatprep.subr.bf16.mxu1 %v1383_v33  ;;  %v893_v32 = vld [vmem:[#allocation7 + $0x38] sm:$0xff] }
  0x57   :  { %v1291_v33 = vpack.c.bf16 %v893_v32, %v892_v31 }
  0x59   :  { %517 = vmatpush1.bf16.msra.mxu0 %v1385_v34  ;;  %600 = vmatpush1.bf16.msra.mxu1 %v1386_v35  ;;  %v910_v34 = vld [vmem:[#allocation7 + $0xc0] sm:$0xff]  ;;  %v911_v35 = vld [vmem:[#allocation7 + $0xc8] sm:$0xff] }
  0x5a   :  { %518 = vmatprep.subr.bf16.mxu0 %v1387_v36  ;;  %601 = vmatprep.subr.bf16.mxu1 %v1389_v37  ;;  %v1293_v36 = vpack.c.bf16 %v911_v35, %v910_v34  ;;  %v894_v37 = vld [vmem:[#allocation7 + $0x40] sm:$0xff] }
  0x5d   :  { %519 = vmatpush1.bf16.msra.mxu0 %v1391_v38  ;;  %602 = vmatpush1.bf16.msra.mxu1 %v1392_v39  ;;  %v895_v38 = vld [vmem:[#allocation7 + $0x48] sm:$0xff] }
  0x5e   :  { %520 = vmatprep.subr.bf16.mxu0 %v1393_v40  ;;  %603 = vmatprep.subr.bf16.mxu1 %v1395_v41  ;;  %v1295_v39 = vpack.c.bf16 %v895_v38, %v894_v37  ;;  %v912_v40 = vld [vmem:[#allocation7 + $0xd0] sm:$0xff]  ;;  %v913_v41 = vld [vmem:[#allocation7 + $0xd8] sm:$0xff] }
  0x61   :  { %521 = vmatpush1.bf16.msra.mxu0 %v1397_v42  ;;  %604 = vmatpush1.bf16.msra.mxu1 %v1398_v43  ;;  %v1297_v42 = vpack.c.bf16 %v913_v41, %v912_v40  ;;  %v896_v43 = vld [vmem:[#allocation7 + $0x50] sm:$0xff] }
  0x62   :  { %522 = vmatprep.subr.bf16.mxu0 %v1399_v44  ;;  %605 = vmatprep.subr.bf16.mxu1 %v1401_v45  ;;  %v897_v44 = vld [vmem:[#allocation7 + $0x58] sm:$0xff] }
  0x63   :  { %v1299_v45 = vpack.c.bf16 %v897_v44, %v896_v43 }
  0x65   :  { %523 = vmatpush1.bf16.msra.mxu0 %v1403_v46  ;;  %606 = vmatpush1.bf16.msra.mxu1 %v1404_v47  ;;  %v914_v46 = vld [vmem:[#allocation7 + $0xe0] sm:$0xff]  ;;  %v915_v47 = vld [vmem:[#allocation7 + $0xe8] sm:$0xff] }
  0x66   :  { %524 = vmatprep.subr.bf16.mxu0 %v1405_v49  ;;  %607 = vmatprep.subr.bf16.mxu1 %v1407_v50  ;;  %v1301_v48 = vpack.c.bf16 %v915_v47, %v914_v46  ;;  %v898_v49 = vld [vmem:[#allocation7 + $0x60] sm:$0xff]  ;;  %v899_v50 = vld [vmem:[#allocation7 + $0x68] sm:$0xff] }
  0x69   :  { %525 = vmatpush1.bf16.msra.mxu0 %v1409_v51  ;;  %608 = vmatpush1.bf16.msra.mxu1 %v1410_v52  ;;  %v1303_v51 = vpack.c.bf16 %v899_v50, %v898_v49  ;;  %v916_v52 = vld [vmem:[#allocation7 + $0xf0] sm:$0xff] }
  0x6a   :  { %526 = vmatprep.subr.bf16.mxu0 %v1411_v53  ;;  %609 = vmatprep.subr.bf16.mxu1 %v1413_v54  ;;  %v917_v53 = vld [vmem:[#allocation7 + $0xf8] sm:$0xff] }
  0x6b   :  { %v1305_v54 = vpack.c.bf16 %v917_v53, %v916_v52 }
  0x6d   :  { %527 = vmatpush1.bf16.msra.mxu0 %v1415_v55  ;;  %610 = vmatpush1.bf16.msra.mxu1 %v1416_v56  ;;  %v900_v55 = vld [vmem:[#allocation7 + $0x70] sm:$0xff]  ;;  %v901_v56 = vld [vmem:[#allocation7 + $0x78] sm:$0xff] }
  0x6e   :  { %528 = vmatprep.subr.bf16.mxu0 %v1417_v57  ;;  %611 = vmatprep.subr.bf16.mxu1 %v1419_v58  ;;  %v1307_v57 = vpack.c.bf16 %v901_v56, %v900_v55 }
  0x71   :  { %529 = vmatpush1.bf16.msra.mxu0 %v1421_v59  ;;  %612 = vmatpush1.bf16.msra.mxu1 %v1422_v60 }
  0x72   :  { %530 = vmatprep.subr.bf16.mxu0 %v1423_v61  ;;  %613 = vmatprep.subr.bf16.mxu1 %v1425_v62 }
  0x75   :  { %531 = vmatpush1.bf16.msra.mxu0 %v1427_v1  ;;  %614 = vmatpush1.bf16.msra.mxu1 %v1428_v2 }
  0x76   :  { %1278 = vmatprep.subr.bf16.mxu0 %v1277_v3  ;;  %1309 = vmatprep.subr.bf16.mxu1 %v1277_v3 }
  0x78   :  { %533 = vmatmul.mubr.bf16.vlgmr.msra.gmra.mrb[0].mxu0 %v1429_v6  ;;  %616 = vmatmul.mubr.bf16.vlgmr.msra.gmra.mrb[0].mxu1 %v1429_v6 }
  0x79   :  { %542 = vmatprep.mubr.bf16.mxu0 %v1432_v9  ;;  %625 = vmatprep.mubr.bf16.mxu1 %v1432_v9 }
  0x7a   :  { %1280 = vmatpush3.bf16.msra.mxu0 %v1279_v10  ;;  %1317 = vmatpush3.bf16.msra.mxu1 %v1279_v10 }
  0x7b   :  { %1282 = vmatprep.subr.bf16.mxu0 %v1281_v11  ;;  %1310 = vmatprep.subr.bf16.mxu1 %v1281_v11 }
  0x7e   :  { %1284 = vmatpush3.bf16.msra.mxu0 %v1283_v14  ;;  %1318 = vmatpush3.bf16.msra.mxu1 %v1283_v14 }
  0x7f   :  { %1286 = vmatprep.subr.bf16.mxu0 %v1285_v24  ;;  %1311 = vmatprep.subr.bf16.mxu1 %v1285_v24 }
  0x80   :  { %543 = vmatmul.mubr.bf16.gmra.mrb[4].mxu0 %v1434_v15  ;;  %626 = vmatmul.mubr.bf16.gmra.mrb[4].mxu1 %v1434_v15 }
  0x81   :  { %552 = vmatprep.mubr.bf16.mxu0 %v1435_v16  ;;  %635 = vmatprep.mubr.bf16.mxu1 %v1435_v16 }
  0x82   :  { %1288 = vmatpush3.bf16.msra.mxu0 %v1287_v27  ;;  %1319 = vmatpush3.bf16.msra.mxu1 %v1287_v27 }
  0x83   :  { %1290 = vmatprep.subr.bf16.mxu0 %v1289_v30  ;;  %1312 = vmatprep.subr.bf16.mxu1 %v1289_v30 }
  0x86   :  { %1292 = vmatpush3.bf16.msra.mxu0 %v1291_v33  ;;  %1320 = vmatpush3.bf16.msra.mxu1 %v1291_v33 }
  0x87   :  { %1294 = vmatprep.subr.bf16.mxu0 %v1293_v36  ;;  %1313 = vmatprep.subr.bf16.mxu1 %v1293_v36 }
  0x88   :  { %553 = vmatmul.mubr.bf16.gmra.mrb[8].mxu0 %v1437_v17  ;;  %636 = vmatmul.mubr.bf16.gmra.mrb[8].mxu1 %v1437_v17 }
  0x89   :  { %562 = vmatprep.mubr.bf16.mxu0 %v1438_v18  ;;  %645 = vmatprep.mubr.bf16.mxu1 %v1438_v18 }
  0x8a   :  { %1296 = vmatpush3.bf16.msra.mxu0 %v1295_v39  ;;  %1321 = vmatpush3.bf16.msra.mxu1 %v1295_v39 }
  0x8b   :  { %1298 = vmatprep.subr.bf16.mxu0 %v1297_v42  ;;  %1314 = vmatprep.subr.bf16.mxu1 %v1297_v42 }
  0x8e   :  { %1300 = vmatpush3.bf16.msra.mxu0 %v1299_v45  ;;  %1322 = vmatpush3.bf16.msra.mxu1 %v1299_v45 }
  0x8f   :  { %1302 = vmatprep.subr.bf16.mxu0 %v1301_v48  ;;  %1315 = vmatprep.subr.bf16.mxu1 %v1301_v48 }
  0x90   :  { %563 = vmatmul.mubr.bf16.gmra.mrb[12].mxu0 %v1440_v19  ;;  %646 = vmatmul.mubr.bf16.gmra.mrb[12].mxu1 %v1440_v19 }
  0x91   :  { %572 = vmatprep.mubr.bf16.mxu0 %v1441_v20  ;;  %655 = vmatprep.mubr.bf16.mxu1 %v1441_v20 }
  0x92   :  { %1304 = vmatpush3.bf16.msra.mxu0 %v1303_v51  ;;  %1323 = vmatpush3.bf16.msra.mxu1 %v1303_v51 }
  0x93   :  { %1306 = vmatprep.subr.bf16.mxu0 %v1305_v54  ;;  %1316 = vmatprep.subr.bf16.mxu1 %v1305_v54 }
  0x96   :  { %1308 = vmatpush3.bf16.msra.mxu0 %v1307_v57  ;;  %1324 = vmatpush3.bf16.msra.mxu1 %v1307_v57 }
  0x98   :  { %573 = vmatmul.mubr.bf16.gmra.mrb[16].mxu0 %v1443_v21  ;;  %656 = vmatmul.mubr.bf16.gmra.mrb[16].mxu1 %v1443_v21 }
 0x14b   :  { %v534_v58 = vpop.f32.mrb[0].mxu0  ;;  %v617_v59 = vpop.f32.mrb[0].mxu1 }
 0x14c   :  { %v666_v60 = vmul.f32 %v534_v58, %v534_v58  ;;  %v686_v61 = vmul.f32 %v617_v59, %v617_v59  ;;  %v536_v62 = vpop.f32.mrb[1].mxu0  ;;  %v619_v63 = vpop.f32.mrb[1].mxu1 }
 0x14d   :  { %v667_v0 = vmul.f32 %v536_v62, %v536_v62  ;;  %v687_v1 = vmul.f32 %v619_v63, %v619_v63  ;;  %v538_v2 = vpop.f32.mrb[2].mxu0  ;;  %v621_v3 = vpop.f32.mrb[2].mxu1 }
 0x14e   :  { %v706_v4 = vadd.f32 %v686_v61, %v666_v60  ;;  %v668_v5 = vmul.f32 %v538_v2, %v538_v2  ;;  %v688_v6 = vmul.f32 %v621_v3, %v621_v3  ;;  %v540_v7 = vpop.f32.mrb[3].mxu0  ;;  %v623_v8 = vpop.f32.mrb[3].mxu1 }
 0x14f   :  { %v707_v9 = vadd.f32 %v687_v1, %v667_v0  ;;  %v669_v10 = vmul.f32 %v540_v7, %v540_v7  ;;  %v689_v11 = vmul.f32 %v623_v8, %v623_v8 }
 0x150   :  { %v1668_v12 = vmax.f32 %v706_v4, 1e-10  ;;  %v708_v13 = vadd.f32 %v688_v6, %v668_v5 }
 0x151   :  { %v1670_v14 = vmax.f32 %v707_v9, 1e-10  ;;  %v709_v15 = vadd.f32 %v689_v11, %v669_v10 }
 0x152   :  { %1444 = vrsqrt.f32 %v1668_v12  ;;  %v1676_v19 = vmax.f32 %v708_v13, 1e-10  ;;  %vm748_vm0 = vcmp.eq.f32.partialorder %v1668_v12, inf  ;;  %vm750_vm3 = vcmp.eq.f32.partialorder %v1668_v12, 0.0 }
 0x153   :  { %v1673_v16 = vmax.f32 %v709_v15, 1e-10  ;;  %v544_v17 = vpop.f32.mrb[4].mxu0  ;;  %v627_v18 = vpop.f32.mrb[4].mxu1  ;;  %1446 = vrsqrt.f32 %v1670_v14  ;;  %vm755_vm1 = vcmp.eq.f32.partialorder %v1670_v14, inf  ;;  %vm757_vm2 = vcmp.eq.f32.partialorder %v1670_v14, 0.0 }
 0x154   :  { %v670_v20 = vmul.f32 %v544_v17, %v544_v17  ;;  %v690_v21 = vmul.f32 %v627_v18, %v627_v18  ;;  %v546_v22 = vpop.f32.mrb[5].mxu0  ;;  %v629_v23 = vpop.f32.mrb[5].mxu1  ;;  %v758_v40 = vand.u32 2147483648, %v1670_v14  ;;  %v751_v41 = vand.u32 2147483648, %v1668_v12 }
 0x155   :  { %v671_v24 = vmul.f32 %v546_v22, %v546_v22  ;;  %v691_v25 = vmul.f32 %v629_v23, %v629_v23  ;;  %v548_v26 = vpop.f32.mrb[6].mxu0  ;;  %v631_v27 = vpop.f32.mrb[6].mxu1  ;;  %1448 = vrsqrt.f32 %v1673_v16  ;;  %vm769_vm4 = vcmp.eq.f32.partialorder %v1673_v16, inf }
 0x156   :  { %v710_v28 = vadd.f32 %v690_v21, %v670_v20  ;;  %v672_v29 = vmul.f32 %v548_v26, %v548_v26  ;;  %v692_v30 = vmul.f32 %v631_v27, %v631_v27  ;;  %v550_v31 = vpop.f32.mrb[7].mxu0  ;;  %v633_v32 = vpop.f32.mrb[7].mxu1  ;;  %1450 = vrsqrt.f32 %v1676_v19 }
 0x157   :  { %v711_v33 = vadd.f32 %v691_v25, %v671_v24  ;;  %v673_v34 = vmul.f32 %v550_v31, %v550_v31  ;;  %v693_v35 = vmul.f32 %v633_v32, %v633_v32  ;;  %vm771_vm5 = vcmp.eq.f32.partialorder %v1673_v16, 0.0 }
 0x158   :  { %v1679_v36 = vmax.f32 %v710_v28, 1e-10  ;;  %v712_v37 = vadd.f32 %v692_v30, %v672_v29  ;;  %v772_v45 = vand.u32 2147483648, %v1673_v16  ;;  %vm762_vm6 = vcmp.eq.f32.partialorder %v1676_v19, inf }
 0x159   :  { %v1683_v38 = vmax.f32 %v711_v33, 1e-10  ;;  %v713_v39 = vadd.f32 %v693_v35, %v673_v34  ;;  %vm764_vm7 = vcmp.eq.f32.partialorder %v1676_v19, 0.0  ;;  %v765_v7 = vand.u32 2147483648, %v1676_v19 }
 0x15a   :  { %1452 = vrsqrt.f32 %v1679_v36  ;;  %v1697_v47 = vmax.f32 %v712_v37, 1e-10  ;;  %vm776_vm8 = vcmp.eq.f32.partialorder %v1679_v36, inf  ;;  %v779_v21 = vand.u32 2147483648, %v1679_v36 }
 0x15b   :  { %v1692_v42 = vmax.f32 %v713_v39, 1e-10  ;;  %v554_v43 = vpop.f32.mrb[8].mxu0  ;;  %v637_v44 = vpop.f32.mrb[8].mxu1  ;;  %1454 = vrsqrt.f32 %v1683_v38  ;;  %vm783_vm9 = vcmp.eq.f32.partialorder %v1683_v38, inf  ;;  %vm785_vm10 = vcmp.eq.f32.partialorder %v1683_v38, 0.0 }
 0x15c   :  { %v1445_v46 = vpop.eup %1444  ;;  %v674_v48 = vmul.f32 %v554_v43, %v554_v43  ;;  %v694_v49 = vmul.f32 %v637_v44, %v637_v44  ;;  %v556_v50 = vpop.f32.mrb[9].mxu0  ;;  %v786_v15 = vand.u32 2147483648, %v1683_v38  ;;  %vm778_vm12 = vcmp.eq.f32.partialorder %v1679_v36, 0.0 }
 0x15d   :  { %v639_v51 = vpop.f32.mrb[9].mxu1  ;;  %v1447_v52 = vpop.eup %1446  ;;  %v675_v53 = vmul.f32 %v556_v50, %v556_v50  ;;  %v747_v57 = vmul.f32 %v1445_v46, %v1668_v12  ;;  %1456 = vrsqrt.f32 %v1692_v42  ;;  %vm797_vm11 = vcmp.eq.f32.partialorder %v1692_v42, inf }
 0x15e   :  { %v695_v54 = vmul.f32 %v639_v51, %v639_v51  ;;  %v558_v55 = vpop.f32.mrb[10].mxu0  ;;  %v641_v56 = vpop.f32.mrb[10].mxu1  ;;  %v1702_v58 = vadd.f32 %v694_v49, %v674_v48  ;;  %v754_v63 = vmul.f32 %v1447_v52, %v1670_v14  ;;  %1458 = vrsqrt.f32 %v1697_v47 }
 0x15f   :  { %v676_v59 = vmul.f32 %v558_v55, %v558_v55  ;;  %v696_v60 = vmul.f32 %v641_v56, %v641_v56  ;;  %v560_v61 = vpop.f32.mrb[11].mxu0  ;;  %v643_v62 = vpop.f32.mrb[11].mxu1  ;;  %v749_v4 = vsel %vm748_vm0, %v1668_v12, %v747_v57  ;;  %vm799_vm13 = vcmp.eq.f32.partialorder %v1692_v42, 0.0 }
 0x160   :  { %v1449_v0 = vpop.eup %1448  ;;  %v715_v1 = vadd.f32 %v695_v54, %v675_v53  ;;  %v677_v2 = vmul.f32 %v560_v61, %v560_v61  ;;  %v697_v3 = vmul.f32 %v643_v62, %v643_v62  ;;  %v756_v6 = vsel %vm755_vm1, %v1670_v14, %v754_v63 }
 0x161   :  { %v716_v5 = vadd.f32 %v696_v60, %v676_v59  ;;  %v759_v9 = vsel %vm757_vm2, %v758_v40, %v756_v6  ;;  %v768_v10 = vmul.f32 %v1449_v0, %v1673_v16  ;;  %v1451_v11 = vpop.eup %1450  ;;  %v752_v13 = vsel %vm750_vm3, %v751_v41, %v749_v4 }
 0x162   :  { %v1713_v8 = vadd.f32 %v697_v3, %v677_v2  ;;  %982 = vmatprep.mubr.f32.mxu0 %v759_v9  ;;  %v761_v20 = vmul.f32 %v1451_v11, %v1676_v19  ;;  %v1743_v49 = vmax.f32 %v715_v1, 1e-10  ;;  %v800_v54 = vand.u32 2147483648, %v1692_v42 }
 0x163   :  { %v564_v17 = vpop.f32.mrb[12].mxu0  ;;  %v647_v18 = vpop.f32.mrb[12].mxu1  ;;  %983 = vmatmul.mubr.f32.vlgmr.msra.gmra.mrb[20].mxu0 %v752_v13  ;;  %v770_v14 = vsel %vm769_vm4, %v1673_v16, %v768_v10  ;;  %v1730_v22 = vmax.f32 %v716_v5, 1e-10  ;;  %v1760_v57 = vmax.f32 %v1702_v58, 1e-10 }
 0x164   :  { %v1453_v12 = vpop.eup %1452  ;;  %v678_v23 = vmul.f32 %v564_v17, %v564_v17  ;;  %v698_v24 = vmul.f32 %v647_v18, %v647_v18  ;;  %v566_v25 = vpop.f32.mrb[13].mxu0  ;;  %v773_v27 = vsel %vm771_vm5, %v772_v45, %v770_v14  ;;  %v763_v33 = vsel %vm762_vm6, %v1676_v19, %v761_v20 }
 0x165   :  { %v649_v26 = vpop.f32.mrb[13].mxu1  ;;  %v1455_v28 = vpop.eup %1454  ;;  %v679_v29 = vmul.f32 %v566_v25, %v566_v25  ;;  %987 = vmatprep.mubr.f32.mxu0 %v773_v27  ;;  %v775_v34 = vmul.f32 %v1453_v12, %v1679_v36  ;;  %v766_v16 = vsel %vm764_vm7, %v765_v7, %v763_v33  ;;  %1460 = vrsqrt.f32 %v1730_v22 }
 0x166   :  { %v699_v30 = vmul.f32 %v649_v26, %v649_v26  ;;  %v568_v31 = vpop.f32.mrb[14].mxu0  ;;  %v651_v32 = vpop.f32.mrb[14].mxu1  ;;  %v1738_v35 = vadd.f32 %v698_v24, %v678_v23  ;;  %v782_v48 = vmul.f32 %v1455_v28, %v1683_v38  ;;  %v1764_v63 = vmax.f32 %v1713_v8, 1e-10 }
 0x167   :  { %v680_v37 = vmul.f32 %v568_v31, %v568_v31  ;;  %v700_v39 = vmul.f32 %v651_v32, %v651_v32  ;;  %v570_v40 = vpop.f32.mrb[15].mxu0  ;;  %v653_v41 = vpop.f32.mrb[15].mxu1  ;;  %988 = vmatmul.mubr.f32.gmra.mrb[22].mxu0 %v766_v16  ;;  %v777_v51 = vsel %vm776_vm8, %v1679_v36, %v775_v34  ;;  %1462 = vrsqrt.f32 %v1743_v49 }
 0x168   :  { %v1457_v43 = vpop.eup %1456  ;;  %v719_v44 = vadd.f32 %v699_v30, %v679_v29  ;;  %v681_v45 = vmul.f32 %v570_v40, %v570_v40  ;;  %v701_v46 = vmul.f32 %v653_v41, %v653_v41  ;;  %v784_v19 = vsel %vm783_vm9, %v1683_v38, %v782_v48 }
 0x169   :  { %v720_v50 = vadd.f32 %v700_v39, %v680_v37  ;;  %v796_v52 = vmul.f32 %v1457_v43, %v1692_v42  ;;  %v787_v55 = vsel %vm785_vm10, %v786_v15, %v784_v19  ;;  %v780_v61 = vsel %vm778_vm12, %v779_v21, %v777_v51 }
 0x16a   :  { %v721_v53 = vadd.f32 %v701_v46, %v681_v45  ;;  %992 = vmatprep.mubr.f32.mxu0 %v787_v55  ;;  %vm790_vm14 = vcmp.eq.f32.partialorder %v1697_v47, inf  ;;  %v793_v5 = vand.u32 2147483648, %v1697_v47  ;;  %1464 = vrsqrt.f32 %v1760_v57 }
 0x16b   :  { %v798_v56 = vsel %vm797_vm11, %v1692_v42, %v796_v52  ;;  %v574_v59 = vpop.f32.mrb[16].mxu0  ;;  %v657_v60 = vpop.f32.mrb[16].mxu1  ;;  %993 = vmatmul.mubr.f32.gmra.mrb[24].mxu0 %v780_v61  ;;  %v1771_v18 = vmax.f32 %v719_v44, 1e-10  ;;  %vm792_vm15 = vcmp.eq.f32.partialorder %v1697_v47, 0.0  ;;  %1466 = vrsqrt.f32 %v1764_v63 }
 0x16c   :  { %v801_v62 = vsel %vm799_vm13, %v800_v54, %v798_v56  ;;  %v682_v38 = vmul.f32 %v574_v59, %v574_v59  ;;  %v702_v0 = vmul.f32 %v657_v60, %v657_v60  ;;  %v576_v36 = vpop.f32.mrb[17].mxu0  ;;  %v659_v1 = vpop.f32.mrb[17].mxu1  ;;  %v1776_v23 = vmax.f32 %v1738_v35, 1e-10 }
 0x16d   :  { %v1459_v42 = vpop.eup %1458  ;;  %v683_v58 = vmul.f32 %v576_v36, %v576_v36  ;;  %v703_v2 = vmul.f32 %v659_v1, %v659_v1  ;;  %997 = vmatprep.mubr.f32.mxu0 %v801_v62  ;;  %v578_v3 = vpop.f32.mrb[18].mxu0  ;;  %v1779_v24 = vmax.f32 %v721_v53, 1e-10  ;;  %v1781_v25 = vmax.f32 %v720_v50, 1e-10 }
 0x16e   :  { %v661_v4 = vpop.f32.mrb[18].mxu1  ;;  %v722_v6 = vadd.f32 %v702_v0, %v682_v38  ;;  %v684_v7 = vmul.f32 %v578_v3, %v578_v3  ;;  %v580_v9 = vpop.f32.mrb[19].mxu0  ;;  %v789_v11 = vmul.f32 %v1459_v42, %v1697_v47  ;;  %1468 = vrsqrt.f32 %v1771_v18 }
 0x16f   :  { %v704_v8 = vmul.f32 %v661_v4, %v661_v4  ;;  %v663_v10 = vpop.f32.mrb[19].mxu1  ;;  %v723_v13 = vadd.f32 %v703_v2, %v683_v58  ;;  %v685_v15 = vmul.f32 %v580_v9, %v580_v9  ;;  %v1461_v26 = vpop.eup %1460  ;;  %1470 = vrsqrt.f32 %v1776_v23 }
 0x170   :  { %v705_v17 = vmul.f32 %v663_v10, %v663_v10  ;;  %v791_v20 = vsel %vm790_vm14, %v1697_v47, %v789_v11  ;;  %v1787_v47 = vmax.f32 %v722_v6, 1e-10  ;;  %1472 = vrsqrt.f32 %v1779_v24 }
 0x171   :  { %v724_v14 = vadd.f32 %v704_v8, %v684_v7  ;;  %v794_v12 = vsel %vm792_vm15, %v793_v5, %v791_v20  ;;  %v1784_v27 = vmax.f32 %v723_v13, 1e-10  ;;  %v1463_v28 = vpop.eup %1462  ;;  %vm811_vm0 = vcmp.eq.f32.partialorder %v1743_v49, inf }
 0x172   :  { %v725_v21 = vadd.f32 %v705_v17, %v685_v15  ;;  %998 = vmatmul.mubr.f32.gmra.mrb[26].mxu0 %v794_v12  ;;  %v810_v29 = vmul.f32 %v1463_v28, %v1743_v49  ;;  %v814_v31 = vand.u32 2147483648, %v1743_v49  ;;  %1474 = vrsqrt.f32 %v1781_v25 }
 0x173   :  { %vm813_vm1 = vcmp.eq.f32.partialorder %v1743_v49, 0.0  ;;  %1476 = vrsqrt.f32 %v1784_v27  ;;  %v1799_v34 = vmax.f32 %v724_v14, 1e-10  ;;  %v817_v39 = vmul.f32 %v1461_v26, %v1730_v22 }
 0x174   :  { %v1791_v30 = vmax.f32 %v725_v21, 1e-10  ;;  %v1465_v32 = vpop.eup %1464  ;;  %v812_v33 = vsel %vm811_vm0, %v1743_v49, %v810_v29  ;;  %vm804_vm2 = vcmp.eq.f32.partialorder %v1760_v57, inf  ;;  %v807_v40 = vand.u32 2147483648, %v1760_v57 }
 0x175   :  { %v815_v35 = vsel %vm813_vm1, %v814_v31, %v812_v33  ;;  %v803_v37 = vmul.f32 %v1465_v32, %v1760_v57  ;;  %1478 = vrsqrt.f32 %v1787_v47  ;;  %v1467_v41 = vpop.eup %1466  ;;  %vm806_vm3 = vcmp.eq.f32.partialorder %v1760_v57, 0.0 }
 0x176   :  { %1002 = vmatprep.mubr.f32.mxu0 %v815_v35  ;;  %1480 = vrsqrt.f32 %v1791_v30  ;;  %v824_v44 = vmul.f32 %v1467_v41, %v1764_v63  ;;  %vm818_vm4 = vcmp.eq.f32.partialorder %v1730_v22, inf  ;;  %vm825_vm5 = vcmp.eq.f32.partialorder %v1764_v63, inf }
 0x177   :  { %v805_v16 = vsel %vm804_vm2, %v1760_v57, %v803_v37  ;;  %v828_v46 = vand.u32 2147483648, %v1764_v63  ;;  %v819_v48 = vsel %vm818_vm4, %v1730_v22, %v817_v39  ;;  %1482 = vrsqrt.f32 %v1799_v34 }
 0x178   :  { %v808_v43 = vsel %vm806_vm3, %v807_v40, %v805_v16  ;;  %v1469_v45 = vpop.eup %1468  ;;  %v826_v49 = vsel %vm825_vm5, %v1764_v63, %v824_v44  ;;  %vm827_vm6 = vcmp.eq.f32.partialorder %v1764_v63, 0.0  ;;  %v821_v50 = vand.u32 2147483648, %v1730_v22 }
 0x179   :  { %1003 = vmatmul.mubr.f32.gmra.mrb[28].mxu0 %v808_v43  ;;  %v838_v51 = vmul.f32 %v1469_v45, %v1771_v18  ;;  %v1471_v52 = vpop.eup %1470  ;;  %v829_v53 = vsel %vm827_vm6, %v828_v46, %v826_v49  ;;  %vm820_vm7 = vcmp.eq.f32.partialorder %v1730_v22, 0.0  ;;  %vm839_vm8 = vcmp.eq.f32.partialorder %v1771_v18, inf }
 0x17a   :  { %v842_v19 = vand.u32 2147483648, %v1771_v18  ;;  %v1473_v54 = vpop.eup %1472  ;;  %1007 = vmatprep.mubr.f32.mxu1 %v829_v53  ;;  %v822_v55 = vsel %vm820_vm7, %v821_v50, %v819_v48  ;;  %vm841_vm9 = vcmp.eq.f32.partialorder %v1771_v18, 0.0  ;;  %v831_v57 = vmul.f32 %v1471_v52, %v1776_v23 }
 0x17b   :  { %v840_v56 = vsel %vm839_vm8, %v1771_v18, %v838_v51  ;;  %1008 = vmatmul.mubr.f32.vlgmr.msra.gmra.mrb[20].mxu1 %v822_v55  ;;  %vm832_vm10 = vcmp.eq.f32.partialorder %v1776_v23, inf  ;;  %v835_v22 = vand.u32 2147483648, %v1776_v23  ;;  %v852_v61 = vmul.f32 %v1473_v54, %v1779_v24 }
 0x17c   :  { %v1475_v59 = vpop.eup %1474  ;;  %v843_v60 = vsel %vm841_vm9, %v842_v19, %v840_v56  ;;  %v833_v63 = vsel %vm832_vm10, %v1776_v23, %v831_v57  ;;  %vm853_vm11 = vcmp.eq.f32.partialorder %v1779_v24, inf  ;;  %v856_v38 = vand.u32 2147483648, %v1779_v24 }
 0x17d   :  { %v1477_v62 = vpop.eup %1476  ;;  %1012 = vmatprep.mubr.f32.mxu1 %v843_v60  ;;  %v845_v0 = vmul.f32 %v1475_v59, %v1781_v25  ;;  %vm834_vm12 = vcmp.eq.f32.partialorder %v1776_v23, 0.0  ;;  %v854_v36 = vsel %vm853_vm11, %v1779_v24, %v852_v61  ;;  %vm855_vm13 = vcmp.eq.f32.partialorder %v1779_v24, 0.0 }
 0x17e   :  { %v866_v1 = vmul.f32 %v1477_v62, %v1784_v27  ;;  %v836_v58 = vsel %vm834_vm12, %v835_v22, %v833_v63  ;;  %v857_v2 = vsel %vm855_vm13, %v856_v38, %v854_v36  ;;  %vm846_vm14 = vcmp.eq.f32.partialorder %v1781_v25, inf }
 0x17f   :  { %v1479_v42 = vpop.eup %1478  ;;  %vm867_vm15 = vcmp.eq.f32.partialorder %v1784_v27, inf  ;;  %1013 = vmatmul.mubr.f32.gmra.mrb[22].mxu1 %v836_v58  ;;  %v847_v4 = vsel %vm846_vm14, %v1781_v25, %v845_v0  ;;  %v870_v6 = vand.u32 2147483648, %v1784_v27  ;;  %v849_v8 = vand.u32 2147483648, %v1781_v25 }
 0x180   :  { %v1481_v3 = vpop.eup %1480  ;;  %v868_v5 = vsel %vm867_vm15, %v1784_v27, %v866_v1  ;;  %v859_v7 = vmul.f32 %v1479_v42, %v1787_v47  ;;  %1017 = vmatprep.mubr.f32.mxu1 %v857_v2  ;;  %vm869_vm0 = vcmp.eq.f32.partialorder %v1784_v27, 0.0  ;;  %vm848_vm1 = vcmp.eq.f32.partialorder %v1781_v25, 0.0 }
 0x181   :  { %v880_v9 = vmul.f32 %v1481_v3, %v1791_v30  ;;  %v1483_v10 = vpop.eup %1482  ;;  %v871_v11 = vsel %vm869_vm0, %v870_v6, %v868_v5  ;;  %vm881_vm2 = vcmp.eq.f32.partialorder %v1791_v30, inf  ;;  %v850_v13 = vsel %vm848_vm1, %v849_v8, %v847_v4 }
 0x182   :  { %vm860_vm3 = vcmp.eq.f32.partialorder %v1787_v47, inf  ;;  %v884_v18 = vand.u32 2147483648, %v1791_v30  ;;  %v873_v14 = vmul.f32 %v1483_v10, %v1799_v34  ;;  %v863_v20 = vand.u32 2147483648, %v1787_v47 }
 0x183   :  { %v882_v15 = vsel %vm881_vm2, %v1791_v30, %v880_v9  ;;  %1018 = vmatmul.mubr.f32.gmra.mrb[24].mxu1 %v850_v13  ;;  %v861_v17 = vsel %vm860_vm3, %v1787_v47, %v859_v7  ;;  %vm883_vm4 = vcmp.eq.f32.partialorder %v1791_v30, 0.0  ;;  %vm862_vm5 = vcmp.eq.f32.partialorder %v1787_v47, 0.0 }
 0x184   :  { %1022 = vmatprep.mubr.f32.mxu1 %v871_v11  ;;  %v885_v21 = vsel %vm883_vm4, %v884_v18, %v882_v15  ;;  %v864_v12 = vsel %vm862_vm5, %v863_v20, %v861_v17  ;;  %vm874_vm6 = vcmp.eq.f32.partialorder %v1799_v34, inf  ;;  %v877_v24 = vand.u32 2147483648, %v1799_v34 }
 0x185   :  { %v875_v23 = vsel %vm874_vm6, %v1799_v34, %v873_v14  ;;  %vm876_vm7 = vcmp.eq.f32.partialorder %v1799_v34, 0.0 }
 0x186   :  { %v878_v25 = vsel %vm876_vm7, %v877_v24, %v875_v23 }
 0x187   :  { %1023 = vmatmul.mubr.f32.gmra.mrb[26].mxu1 %v864_v12 }
 0x188   :  { %1027 = vmatprep.mubr.f32.mxu1 %v885_v21 }
 0x18b   :  { %1028 = vmatmul.mubr.f32.gmra.mrb[28].mxu1 %v878_v25 }
 0x236   :  { %v1247_v26 = vpop.f32.mrb[20].mxu0 }
 0x237   :  { %v1248_v27 = vpop.f32.mrb[21].mxu0 }
 0x238   :  { %v1249_v28 = vadd.f32 %v1248_v27, %v1247_v26 }
 0x23a   :  { %v1033_v29 = vmax.f32 %v1249_v28, 1e-05  ;;  %v1250_v30 = vpop.f32.mrb[22].mxu0 }
 0x23b   :  { %v1251_v47 = vpop.f32.mrb[23].mxu0 }
 0x23c   :  { %1484 = vlog2.f32 %v1033_v29  ;;  %v1252_v31 = vadd.f32 %v1251_v47, %v1250_v30 }
 0x23e   :  { %v1034_v32 = vmax.f32 %v1252_v31, 1e-05  ;;  %v1253_v33 = vpop.f32.mrb[24].mxu0 }
 0x23f   :  { %v1254_v35 = vpop.f32.mrb[25].mxu0 }
 0x240   :  { %1486 = vlog2.f32 %v1034_v32  ;;  %v1255_v37 = vadd.f32 %v1254_v35, %v1253_v33 }
 0x242   :  { %v1035_v39 = vmax.f32 %v1255_v37, 1e-05 }
 0x244   :  { %1488 = vlog2.f32 %v1035_v39 }
 0x245   :  { %v1256_v40 = vpop.f32.mrb[26].mxu0 }
 0x246   :  { %v1485_v41 = vpop.eup %1484  ;;  %v1257_v34 = vpop.f32.mrb[27].mxu0 }
 0x247   :  { %v1044_v16 = vmul.f32 0.6931472, %v1485_v41  ;;  %v1258_v43 = vadd.f32 %v1257_v34, %v1256_v40 }
 0x249   :  { %v1063_v44 = vmul.f32 0.6948712, %v1044_v16  ;;  %v1036_v45 = vmax.f32 %v1258_v43, 1e-05 }
 0x24a   :  { %v1487_v46 = vpop.eup %1486 }
 0x24b   :  { %v1073_v48 = vadd.f32 2.4, %v1063_v44  ;;  %v1046_v49 = vmul.f32 0.6931472, %v1487_v46  ;;  %1490 = vlog2.f32 %v1036_v45 }
 0x24c   :  { %v1259_v55 = vpop.f32.mrb[28].mxu0 }
 0x24d   :  { %v1205_v50 = vclamps-f32 %v1073_v48, 4.0  ;;  %v1064_v51 = vmul.f32 0.6948712, %v1046_v49  ;;  %v1260_v57 = vpop.f32.mrb[29].mxu0 }
 0x24e   :  { %v1489_v52 = vpop.eup %1488  ;;  %v1261_v59 = vadd.f32 %v1260_v57, %v1259_v55  ;;  %v1262_v62 = vpop.f32.mrb[20].mxu1 }
 0x24f   :  { %1103 = vst [vmem:[#allocation8] sm:$0xff] %v1205_v50  ;;  %v1074_v53 = vadd.f32 2.4, %v1064_v51  ;;  %v1048_v19 = vmul.f32 0.6931472, %v1489_v52  ;;  %v1263_v0 = vpop.f32.mrb[21].mxu1 }
 0x250   :  { %v1037_v61 = vmax.f32 %v1261_v59, 1e-05  ;;  %v1264_v36 = vadd.f32 %v1263_v0, %v1262_v62 }
 0x251   :  { %v1206_v54 = vclamps-f32 %v1074_v53, 4.0  ;;  %v1065_v56 = vmul.f32 0.6948712, %v1048_v19 }
 0x252   :  { %1492 = vlog2.f32 %v1037_v61  ;;  %v1038_v42 = vmax.f32 %v1264_v36, 1e-05  ;;  %v1265_v58 = vpop.f32.mrb[22].mxu1 }
 0x253   :  { %1104 = vst [vmem:[#allocation8 + $0x8] sm:$0xff] %v1206_v54  ;;  %v1075_v60 = vadd.f32 2.4, %v1065_v56  ;;  %v1266_v3 = vpop.f32.mrb[23].mxu1 }
 0x254   :  { %1494 = vlog2.f32 %v1038_v42  ;;  %v1267_v4 = vadd.f32 %v1266_v3, %v1265_v58 }
 0x255   :  { %v1491_v22 = vpop.eup %1490  ;;  %v1207_v63 = vclamps-f32 %v1075_v60, 4.0 }
 0x256   :  { %v1050_v38 = vmul.f32 0.6931472, %v1491_v22  ;;  %v1039_v6 = vmax.f32 %v1267_v4, 1e-05  ;;  %v1268_v7 = vpop.f32.mrb[24].mxu1 }
 0x257   :  { %1105 = vst [vmem:[#allocation8 + $0x10] sm:$0xff] %v1207_v63  ;;  %v1269_v8 = vpop.f32.mrb[25].mxu1 }
 0x258   :  { %v1066_v1 = vmul.f32 0.6948712, %v1050_v38  ;;  %1496 = vlog2.f32 %v1039_v6  ;;  %v1270_v9 = vadd.f32 %v1269_v8, %v1268_v7 }
 0x25a   :  { %v1076_v2 = vadd.f32 2.4, %v1066_v1  ;;  %v1040_v11 = vmax.f32 %v1270_v9, 1e-05  ;;  %v1271_v13 = vpop.f32.mrb[26].mxu1 }
 0x25b   :  { %v1272_v17 = vpop.f32.mrb[27].mxu1 }
 0x25c   :  { %v1208_v5 = vclamps-f32 %v1076_v2, 4.0  ;;  %v1493_v10 = vpop.eup %1492  ;;  %1498 = vlog2.f32 %v1040_v11  ;;  %v1273_v18 = vadd.f32 %v1272_v17, %v1271_v13 }
 0x25d   :  { %v1052_v15 = vmul.f32 0.6931472, %v1493_v10 }
 0x25e   :  { %1106 = vst [vmem:[#allocation8 + $0x18] sm:$0xff] %v1208_v5  ;;  %v1495_v20 = vpop.eup %1494  ;;  %v1041_v21 = vmax.f32 %v1273_v18, 1e-05  ;;  %v1274_v12 = vpop.f32.mrb[28].mxu1 }
 0x25f   :  { %v1067_v14 = vmul.f32 0.6948712, %v1052_v15  ;;  %v1054_v24 = vmul.f32 0.6931472, %v1495_v20  ;;  %v1275_v25 = vpop.f32.mrb[29].mxu1 }
 0x260   :  { %1500 = vlog2.f32 %v1041_v21  ;;  %v1276_v26 = vadd.f32 %v1275_v25, %v1274_v12 }
 0x261   :  { %v1077_v23 = vadd.f32 2.4, %v1067_v14  ;;  %v1068_v28 = vmul.f32 0.6948712, %v1054_v24 }
 0x262   :  { %v1497_v29 = vpop.eup %1496  ;;  %v1042_v30 = vmax.f32 %v1276_v26, 1e-05 }
 0x263   :  { %v1209_v27 = vclamps-f32 %v1077_v23, 4.0  ;;  %v1078_v47 = vadd.f32 2.4, %v1068_v28  ;;  %v1056_v31 = vmul.f32 0.6931472, %v1497_v29 }
 0x264   :  { %1502 = vlog2.f32 %v1042_v30 }
 0x265   :  { %1107 = vst [vmem:[#allocation8 + $0x20] sm:$0xff] %v1209_v27  ;;  %v1210_v32 = vclamps-f32 %v1078_v47, 4.0  ;;  %v1069_v33 = vmul.f32 0.6948712, %v1056_v31 }
 0x266   :  { %v1499_v35 = vpop.eup %1498 }
 0x267   :  { %1108 = vst [vmem:[#allocation8 + $0x28] sm:$0xff] %v1210_v32  ;;  %v1079_v37 = vadd.f32 2.4, %v1069_v33  ;;  %v1058_v39 = vmul.f32 0.6931472, %v1499_v35 }
 0x269   :  { %v1211_v40 = vclamps-f32 %v1079_v37, 4.0  ;;  %v1070_v41 = vmul.f32 0.6948712, %v1058_v39 }
 0x26a   :  { %v1501_v34 = vpop.eup %1500 }
 0x26b   :  { %1109 = vst [vmem:[#allocation8 + $0x30] sm:$0xff] %v1211_v40  ;;  %v1080_v16 = vadd.f32 2.4, %v1070_v41  ;;  %v1060_v43 = vmul.f32 0.6931472, %v1501_v34 }
 0x26d   :  { %v1212_v44 = vclamps-f32 %v1080_v16, 4.0  ;;  %v1071_v45 = vmul.f32 0.6948712, %v1060_v43 }
 0x26e   :  { %v1503_v46 = vpop.eup %1502 }
 0x26f   :  { %1110 = vst [vmem:[#allocation8 + $0x38] sm:$0xff] %v1212_v44  ;;  %v1081_v48 = vadd.f32 2.4, %v1071_v45  ;;  %v1062_v49 = vmul.f32 0.6931472, %v1503_v46 }
 0x271   :  { %v1213_v50 = vclamps-f32 %v1081_v48, 4.0  ;;  %v1072_v51 = vmul.f32 0.6948712, %v1062_v49 }
 0x273   :  { %1111 = vst [vmem:[#allocation8 + $0x40] sm:$0xff] %v1213_v50  ;;  %v1082_v52 = vadd.f32 2.4, %v1072_v51 }
 0x275   :  { %v1214_v53 = vclamps-f32 %v1082_v52, 4.0 }
 0x277   :  { %1112 = vst [vmem:[#allocation8 + $0x48] sm:$0xff] %v1214_v53 }
 0x278   :  { %1581 = shalt.err (!%p1578_p0)
}
 0x279   :  { %s1582_s27 = scalar_lea.hbm %s1877_s3, 1280 }
 0x27a   :  { %p1583_p1 = scmp.ne.s32.totalorder %s1877_s3, %s1582_s27  ;;  %p1586_p2 = scmp.lt.u32.totalorder %s1582_s27, %s1877_s3 }
 0x27c   :  { %p1588_p3 = pnand %p1586_p2, %p1583_p1 }
 0x27e   :  { %1591 = shalt.err (!%p1588_p3)
}
 0x27f   :  { %1124 = dma.vmem_to_hbm [thread:$0]  %s1119_s23, 1280, %s1877_s3, [#allocation4], %s1602_s1, %s1602_s1, %s1603_s9  }
 0x280   :  { %1596 = dma.done.wait [#allocation4], 1280  }
 0x281   :  { %1597 = vsyncadd [#allocation4], 4294966016 }
 0x282   :  { %1128 = vsyncpa [#allocation3], 1 }
 0x283   :  { %1129 = vsyncpa [#allocation6], 1 }
 0x284   :  { %1130 = vsyncpa [#allocation4], 1 }

</bundles_post_ra>
